<compile_context>
chip_gen: v5e
topology: v5e:2x2
jax: 0.10.0
libtpu: 0.0.40
codegen_flags: <defaults>
</compile_context>

<pallas_src>
import functools

import jax
import jax.numpy as jnp
from jax import lax
from jax.experimental import pallas as pl
from jax.experimental.pallas import tpu as pltpu


def _patch_embed_kernel(x_ref, w_ref, b_ref, g_ref, beta_ref, o_ref,
                        *, K, S, QW, TH, Wo, C_out, eps):
    # x_ref   : (1, S, Hq, Wq, S*C_in')   row-phase-decomposed padded input
    # w_ref   : (K*QW, S*C_in', C_out)    per-tap-group weights (f32, zero-padded)
    # b_ref   : (1, C_out)                conv bias
    # g_ref   : (1, C_out)                LayerNorm gamma
    # beta_ref: (1, C_out)                LayerNorm beta
    # o_ref   : (1, TH*Wo, C_out)         output token tile
    t = pl.program_id(1)
    r0 = t * TH                           # first output row of this tile
    TT = TH * Wo
    GC = x_ref.shape[-1]                  # S * C_in'  (contraction depth per dot)

    acc = jnp.zeros((TT, C_out), jnp.float32)
    # K * ceil(K/S) tap groups, fully unrolled.  Each group covers S taps along
    # the kernel-width axis in one MXU dot; every load is a contiguous slice.
    for kh in range(K):
        qh, ph = kh // S, kh % S
        for j in range(QW):
            lhs = (x_ref[0, ph, pl.ds(r0 + qh, TH), pl.ds(j, Wo), :]
                   .reshape(TT, GC).astype(jnp.float32))
            acc = acc + jnp.dot(lhs, w_ref[kh * QW + j],
                                preferred_element_type=jnp.float32)

    acc = acc + b_ref[...]                # conv bias, broadcast over tokens

    # Fused LayerNorm over C_out (last dim).
    mean = jnp.mean(acc, axis=-1, keepdims=True)
    cen = acc - mean
    var = jnp.mean(cen * cen, axis=-1, keepdims=True)
    inv = lax.rsqrt(var + jnp.float32(eps))
    y = cen * inv * g_ref[...] + beta_ref[...]

    o_ref[0] = y.astype(o_ref.dtype)


def _pick_row_block(Ho, Wo, C_out, budget_bytes=128 * 1024):
    """Largest row tile keeping the f32 accumulator ~<= budget, tokens % 8 == 0."""
    max_tokens = max(8, budget_bytes // (4 * max(1, C_out)))
    th = max(1, min(Ho, max_tokens // max(1, Wo)))
    for cand in range(th, 0, -1):
        if Ho % cand == 0 and (cand * Wo) % 8 == 0:
            return cand
    return Ho  # single tile per image; a full-N block is always legal


def overlap_patch_embed_pallas(x_nchw, weight, bias, gamma, beta,
                               *, stride, padding, eps=1e-5, row_block=None):
    """x: (B,C_in,H,W), weight: (C_out,C_in,K,K) -> (tokens (B,N,C_out), Ho, Wo)."""
    B, C_in, H, W = x_nchw.shape
    C_out, C_in_w, K, K2 = weight.shape
    assert C_in_w == C_in and K2 == K
    S, P = int(stride), int(padding)

    Ho = (H + 2 * P - K) // S + 1
    Wo = (W + 2 * P - K) // S + 1
    halo = (K - 1) // S
    QW = halo + 1                          # ceil(K / S): tap groups per kernel row
    Hq, Wq = Ho + halo, Wo + halo          # phase-grid extents

    # Pad C_in up to a multiple of 8 (zero contributions; nicer lane layout).
    c_pad = (-C_in) % 8
    C_inp = C_in + c_pad
    GC = S * C_inp                         # contraction depth per tap group

    # NCHW -> NHWC, spatial zero-pad to (Hq*S, Wq*S) with P on top/left.
    # (Single layout pass; XLA fuses transpose + pad + phase reshape.)
    x_nhwc = jnp.transpose(x_nchw, (0, 2, 3, 1))
    rows_keep = min(H, Hq * S - P)
    cols_keep = min(W, Wq * S - P)
    x_nhwc = x_nhwc[:, :rows_keep, :cols_keep, :]
    xp = jnp.pad(
        x_nhwc,
        ((0, 0), (P, Hq * S - P - rows_keep), (P, Wq * S - P - cols_keep),
         (0, c_pad)))
    # Row-phase decomposition only: (B, Hq, S, Wq, S, C') -> (B, S, Hq, Wq, S*C').
    xr = (xp.reshape(B, Hq, S, Wq, S, C_inp)
            .transpose(0, 2, 1, 3, 4, 5)
            .reshape(B, S, Hq, Wq, GC))

    # Per-tap-group weights: group g = kh*QW + j covers taps kw = j*S + pw,
    # pw in [0, S); kw >= K and ci >= C_in rows are zero (exactness preserved).
    w_t = jnp.transpose(weight, (2, 3, 1, 0))                         # (K,K,Cin,Cout)
    w_t = jnp.pad(w_t, ((0, 0), (0, QW * S - K), (0, c_pad), (0, 0)))  # (K,QW*S,C',Cout)
    w_groups = (w_t.reshape(K, QW, S, C_inp, C_out)
                   .reshape(K * QW, GC, C_out)
                   .astype(jnp.float32))
    b2 = bias.reshape(1, C_out).astype(jnp.float32)
    g2 = gamma.reshape(1, C_out).astype(jnp.float32)
    bt2 = beta.reshape(1, C_out).astype(jnp.float32)

    if row_block is None:
        TH = _pick_row_block(Ho, Wo, C_out)
    else:
        TH = int(row_block)
        if Ho % TH != 0:
            raise ValueError("row_block must divide Ho")
        if (TH * Wo) % 8 != 0 and TH != Ho:
            raise ValueError("row_block*Wo must be a multiple of 8 (or TH == Ho)")
    TT = TH * Wo
    grid = (B, Ho // TH)

    kernel = functools.partial(_patch_embed_kernel, K=K, S=S, QW=QW, TH=TH,
                               Wo=Wo, C_out=C_out, eps=eps)

    out = pl.pallas_call(
        kernel,
        out_shape=jax.ShapeDtypeStruct((B, Ho * Wo, C_out), x_nchw.dtype),
        grid_spec=pltpu.PrefetchScalarGridSpec(
            num_scalar_prefetch=0,
            grid=grid,
            in_specs=[
                # Whole phase-reshaped image per batch element; same block across
                # row tiles => DMA'd only when the batch index changes.
                pl.BlockSpec((1, S, Hq, Wq, GC),
                             lambda b, t: (b, 0, 0, 0, 0)),
                pl.BlockSpec((K * QW, GC, C_out), lambda b, t: (0, 0, 0)),
                pl.BlockSpec((1, C_out), lambda b, t: (0, 0)),
                pl.BlockSpec((1, C_out), lambda b, t: (0, 0)),
                pl.BlockSpec((1, C_out), lambda b, t: (0, 0)),
            ],
            out_specs=pl.BlockSpec((1, TT, C_out), lambda b, t: (b, t, 0)),
        ),
        compiler_params=pltpu.CompilerParams(
            dimension_semantics=("parallel", "parallel"),
            vmem_limit_bytes=64 * 1024 * 1024),
    )(xr, w_groups, b2, g2, bt2)

    return out, Ho, Wo


def overlap_patch_embed_reference(x_nchw, weight, bias, gamma, beta,
                                  *, stride, padding, eps=1e-5):
    """Pure-JAX reference: lax conv (NCHW, like PyTorch) + LayerNorm."""
    S, P = stride, padding
    C_out = weight.shape[0]
    out = lax.conv_general_dilated(
        x_nchw, weight, window_strides=(S, S), padding=((P, P), (P, P)),
        dimension_numbers=("NCHW", "OIHW", "NCHW"),
    ) + bias.reshape(1, C_out, 1, 1)
    B, _, Ho, Wo = out.shape
    tok = jnp.transpose(out.reshape(B, C_out, Ho * Wo), (0, 2, 1)).astype(jnp.float32)
    mean = tok.mean(-1, keepdims=True)
    var = ((tok - mean) ** 2).mean(-1, keepdims=True)
    y = (tok - mean) / jnp.sqrt(var + eps) * gamma + beta
    return y.astype(x_nchw.dtype), Ho, Wo


def _run_case(key, B, C_in, H, W, C_out, K, S, P, row_blocks):
    kx, kw, kb, kg, kbt = jax.random.split(key, 5)
    x = jax.random.normal(kx, (B, C_in, H, W), dtype=jnp.float32)
    weight = jax.random.normal(kw, (C_out, C_in, K, K), dtype=jnp.float32) * 0.05
    bias = jax.random.normal(kb, (C_out,), dtype=jnp.float32) * 0.1
    gamma = 1.0 + 0.1 * jax.random.normal(kg, (C_out,), dtype=jnp.float32)
    beta = 0.1 * jax.random.normal(kbt, (C_out,), dtype=jnp.float32)

    ref, Ho_r, Wo_r = overlap_patch_embed_reference(
        x, weight, bias, gamma, beta, stride=S, padding=P)

    for rb in row_blocks:
        out, Ho, Wo = overlap_patch_embed_pallas(
            x, weight, bias, gamma, beta, stride=S, padding=P, row_block=rb)
        out = jax.block_until_ready(out)
        assert (Ho, Wo) == (Ho_r, Wo_r)
        assert out.shape == (B, Ho * Wo, C_out)
        err = float(jnp.max(jnp.abs(out - ref)))
        assert jnp.allclose(out, ref, atol=1e-4, rtol=1e-4), f"max err {err}"


if __name__ == "__main__":
    key = jax.random.PRNGKey(0)
    k1, k2 = jax.random.split(key, 2)

    # Stage-0-like config: RGBD input (C_in=4), kernel 7, stride 4, padding 3,
    # embed dim 32.  Checks both a multi-row-tile grid and the default tiling.
    _run_case(k1, B=2, C_in=4, H=32, W=32, C_out=32, K=7, S=4, P=3,
              row_blocks=(4, None))

    # Stage-1-like config: kernel 3, stride 2, padding 1, deeper channels.
    # Multi-row-tile grid exercises the halo row reads across tile boundaries.
    _run_case(k2, B=1, C_in=8, H=16, W=16, C_out=64, K=3, S=2, P=1,
              row_blocks=(2,))

    print("KERNEL_OK")
</pallas_src>

<mosaic_0001>
module attributes {stable_mosaic.version = 11 : i64} {
  func.func @_patch_embed_kernel(%arg0: i32, %arg1: i32, %arg2: memref<1x4x9x9x32xf32, #tpu.memory_space<vmem>>, %arg3: memref<14x32x32xf32, #tpu.memory_space<vmem>>, %arg4: memref<1x32xf32, #tpu.memory_space<vmem>>, %arg5: memref<1x32xf32, #tpu.memory_space<vmem>>, %arg6: memref<1x32xf32, #tpu.memory_space<vmem>>, %arg7: memref<1x32x32xf32, #tpu.memory_space<vmem>>) attributes {dimension_semantics = [#tpu.dimension_semantics<parallel>, #tpu.dimension_semantics<parallel>], iteration_bounds = array<i64: 2, 2>, scalar_prefetch = 0 : i64, scratch_operands = 0 : i64, tpu.core_type = #tpu.core_type<tc>, window_params = [{transform_indices = @transform_0, window_bounds = array<i64: 1, 4, 9, 9, 32>}, {pipeline_mode = #tpu.pipeline_mode<synchronous>, transform_indices = @transform_1, window_bounds = array<i64: 14, 32, 32>}, {pipeline_mode = #tpu.pipeline_mode<synchronous>, transform_indices = @transform_2, window_bounds = array<i64: 1, 32>}, {pipeline_mode = #tpu.pipeline_mode<synchronous>, transform_indices = @transform_3, window_bounds = array<i64: 1, 32>}, {pipeline_mode = #tpu.pipeline_mode<synchronous>, transform_indices = @transform_4, window_bounds = array<i64: 1, 32>}, {transform_indices = @transform_5, window_bounds = array<i64: 1, 32, 32>}]} {
    %c4_i32 = arith.constant 4 : i32
    %0 = arith.muli %arg1, %c4_i32 : i32
    %cst = arith.constant 0.000000e+00 : f32
    %1 = vector.broadcast %cst : f32 to vector<32x32xf32>
    %c0_i32 = arith.constant 0 : i32
    %2 = arith.addi %0, %c0_i32 : i32
    %c0 = arith.constant 0 : index
    %c0_0 = arith.constant 0 : index
    %3 = arith.index_cast %2 : i32 to index
    %c0_1 = arith.constant 0 : index
    %c0_2 = arith.constant 0 : index
    %4 = vector.load %arg2[%c0, %c0_0, %3, %c0_1, %c0_2] : memref<1x4x9x9x32xf32, #tpu.memory_space<vmem>>, vector<1x1x4x8x32xf32>
    %5 = vector.shape_cast %4 : vector<1x1x4x8x32xf32> to vector<4x8x32xf32>
    %6 = vector.shape_cast %5 : vector<4x8x32xf32> to vector<32x32xf32>
    %c0_3 = arith.constant 0 : index
    %c0_4 = arith.constant 0 : index
    %c0_5 = arith.constant 0 : index
    %7 = vector.load %arg3[%c0_3, %c0_4, %c0_5] : memref<14x32x32xf32, #tpu.memory_space<vmem>>, vector<1x32x32xf32>
    %8 = vector.shape_cast %7 : vector<1x32x32xf32> to vector<32x32xf32>
    %cst_6 = arith.constant dense<0.000000e+00> : vector<32x32xf32>
    %9 = tpu.matmul %6, %8, %cst_6 {dimension_numbers = #tpu.dot_dimension_numbers<[1], [0], [0], [1], [0, 0, 1, 1], [], []>} : vector<32x32xf32>, vector<32x32xf32>, vector<32x32xf32> -> vector<32x32xf32>
    %10 = arith.addf %1, %9 : vector<32x32xf32>
    %c0_i32_7 = arith.constant 0 : i32
    %11 = arith.addi %0, %c0_i32_7 : i32
    %c0_8 = arith.constant 0 : index
    %c0_9 = arith.constant 0 : index
    %12 = arith.index_cast %11 : i32 to index
    %c1 = arith.constant 1 : index
    %c0_10 = arith.constant 0 : index
    %13 = vector.load %arg2[%c0_8, %c0_9, %12, %c1, %c0_10] : memref<1x4x9x9x32xf32, #tpu.memory_space<vmem>>, vector<1x1x4x8x32xf32>
    %14 = vector.shape_cast %13 : vector<1x1x4x8x32xf32> to vector<4x8x32xf32>
    %15 = vector.shape_cast %14 : vector<4x8x32xf32> to vector<32x32xf32>
    %c1_11 = arith.constant 1 : index
    %c0_12 = arith.constant 0 : index
    %c0_13 = arith.constant 0 : index
    %16 = vector.load %arg3[%c1_11, %c0_12, %c0_13] : memref<14x32x32xf32, #tpu.memory_space<vmem>>, vector<1x32x32xf32>
    %17 = vector.shape_cast %16 : vector<1x32x32xf32> to vector<32x32xf32>
    %cst_14 = arith.constant dense<0.000000e+00> : vector<32x32xf32>
    %18 = tpu.matmul %15, %17, %cst_14 {dimension_numbers = #tpu.dot_dimension_numbers<[1], [0], [0], [1], [0, 0, 1, 1], [], []>} : vector<32x32xf32>, vector<32x32xf32>, vector<32x32xf32> -> vector<32x32xf32>
    %19 = arith.addf %10, %18 : vector<32x32xf32>
    %c0_i32_15 = arith.constant 0 : i32
    %20 = arith.addi %0, %c0_i32_15 : i32
    %c0_16 = arith.constant 0 : index
    %c1_17 = arith.constant 1 : index
    %21 = arith.index_cast %20 : i32 to index
    %c0_18 = arith.constant 0 : index
    %c0_19 = arith.constant 0 : index
    %22 = vector.load %arg2[%c0_16, %c1_17, %21, %c0_18, %c0_19] : memref<1x4x9x9x32xf32, #tpu.memory_space<vmem>>, vector<1x1x4x8x32xf32>
    %23 = vector.shape_cast %22 : vector<1x1x4x8x32xf32> to vector<4x8x32xf32>
    %24 = vector.shape_cast %23 : vector<4x8x32xf32> to vector<32x32xf32>
    %c2 = arith.constant 2 : index
    %c0_20 = arith.constant 0 : index
    %c0_21 = arith.constant 0 : index
    %25 = vector.load %arg3[%c2, %c0_20, %c0_21] : memref<14x32x32xf32, #tpu.memory_space<vmem>>, vector<1x32x32xf32>
    %26 = vector.shape_cast %25 : vector<1x32x32xf32> to vector<32x32xf32>
    %cst_22 = arith.constant dense<0.000000e+00> : vector<32x32xf32>
    %27 = tpu.matmul %24, %26, %cst_22 {dimension_numbers = #tpu.dot_dimension_numbers<[1], [0], [0], [1], [0, 0, 1, 1], [], []>} : vector<32x32xf32>, vector<32x32xf32>, vector<32x32xf32> -> vector<32x32xf32>
    %28 = arith.addf %19, %27 : vector<32x32xf32>
    %c0_i32_23 = arith.constant 0 : i32
    %29 = arith.addi %0, %c0_i32_23 : i32
    %c0_24 = arith.constant 0 : index
    %c1_25 = arith.constant 1 : index
    %30 = arith.index_cast %29 : i32 to index
    %c1_26 = arith.constant 1 : index
    %c0_27 = arith.constant 0 : index
    %31 = vector.load %arg2[%c0_24, %c1_25, %30, %c1_26, %c0_27] : memref<1x4x9x9x32xf32, #tpu.memory_space<vmem>>, vector<1x1x4x8x32xf32>
    %32 = vector.shape_cast %31 : vector<1x1x4x8x32xf32> to vector<4x8x32xf32>
    %33 = vector.shape_cast %32 : vector<4x8x32xf32> to vector<32x32xf32>
    %c3 = arith.constant 3 : index
    %c0_28 = arith.constant 0 : index
    %c0_29 = arith.constant 0 : index
    %34 = vector.load %arg3[%c3, %c0_28, %c0_29] : memref<14x32x32xf32, #tpu.memory_space<vmem>>, vector<1x32x32xf32>
    %35 = vector.shape_cast %34 : vector<1x32x32xf32> to vector<32x32xf32>
    %cst_30 = arith.constant dense<0.000000e+00> : vector<32x32xf32>
    %36 = tpu.matmul %33, %35, %cst_30 {dimension_numbers = #tpu.dot_dimension_numbers<[1], [0], [0], [1], [0, 0, 1, 1], [], []>} : vector<32x32xf32>, vector<32x32xf32>, vector<32x32xf32> -> vector<32x32xf32>
    %37 = arith.addf %28, %36 : vector<32x32xf32>
    %c0_i32_31 = arith.constant 0 : i32
    %38 = arith.addi %0, %c0_i32_31 : i32
    %c0_32 = arith.constant 0 : index
    %c2_33 = arith.constant 2 : index
    %39 = arith.index_cast %38 : i32 to index
    %c0_34 = arith.constant 0 : index
    %c0_35 = arith.constant 0 : index
    %40 = vector.load %arg2[%c0_32, %c2_33, %39, %c0_34, %c0_35] : memref<1x4x9x9x32xf32, #tpu.memory_space<vmem>>, vector<1x1x4x8x32xf32>
    %41 = vector.shape_cast %40 : vector<1x1x4x8x32xf32> to vector<4x8x32xf32>
    %42 = vector.shape_cast %41 : vector<4x8x32xf32> to vector<32x32xf32>
    %c4 = arith.constant 4 : index
    %c0_36 = arith.constant 0 : index
    %c0_37 = arith.constant 0 : index
    %43 = vector.load %arg3[%c4, %c0_36, %c0_37] : memref<14x32x32xf32, #tpu.memory_space<vmem>>, vector<1x32x32xf32>
    %44 = vector.shape_cast %43 : vector<1x32x32xf32> to vector<32x32xf32>
    %cst_38 = arith.constant dense<0.000000e+00> : vector<32x32xf32>
    %45 = tpu.matmul %42, %44, %cst_38 {dimension_numbers = #tpu.dot_dimension_numbers<[1], [0], [0], [1], [0, 0, 1, 1], [], []>} : vector<32x32xf32>, vector<32x32xf32>, vector<32x32xf32> -> vector<32x32xf32>
    %46 = arith.addf %37, %45 : vector<32x32xf32>
    %c0_i32_39 = arith.constant 0 : i32
    %47 = arith.addi %0, %c0_i32_39 : i32
    %c0_40 = arith.constant 0 : index
    %c2_41 = arith.constant 2 : index
    %48 = arith.index_cast %47 : i32 to index
    %c1_42 = arith.constant 1 : index
    %c0_43 = arith.constant 0 : index
    %49 = vector.load %arg2[%c0_40, %c2_41, %48, %c1_42, %c0_43] : memref<1x4x9x9x32xf32, #tpu.memory_space<vmem>>, vector<1x1x4x8x32xf32>
    %50 = vector.shape_cast %49 : vector<1x1x4x8x32xf32> to vector<4x8x32xf32>
    %51 = vector.shape_cast %50 : vector<4x8x32xf32> to vector<32x32xf32>
    %c5 = arith.constant 5 : index
    %c0_44 = arith.constant 0 : index
    %c0_45 = arith.constant 0 : index
    %52 = vector.load %arg3[%c5, %c0_44, %c0_45] : memref<14x32x32xf32, #tpu.memory_space<vmem>>, vector<1x32x32xf32>
    %53 = vector.shape_cast %52 : vector<1x32x32xf32> to vector<32x32xf32>
    %cst_46 = arith.constant dense<0.000000e+00> : vector<32x32xf32>
    %54 = tpu.matmul %51, %53, %cst_46 {dimension_numbers = #tpu.dot_dimension_numbers<[1], [0], [0], [1], [0, 0, 1, 1], [], []>} : vector<32x32xf32>, vector<32x32xf32>, vector<32x32xf32> -> vector<32x32xf32>
    %55 = arith.addf %46, %54 : vector<32x32xf32>
    %c0_i32_47 = arith.constant 0 : i32
    %56 = arith.addi %0, %c0_i32_47 : i32
    %c0_48 = arith.constant 0 : index
    %c3_49 = arith.constant 3 : index
    %57 = arith.index_cast %56 : i32 to index
    %c0_50 = arith.constant 0 : index
    %c0_51 = arith.constant 0 : index
    %58 = vector.load %arg2[%c0_48, %c3_49, %57, %c0_50, %c0_51] : memref<1x4x9x9x32xf32, #tpu.memory_space<vmem>>, vector<1x1x4x8x32xf32>
    %59 = vector.shape_cast %58 : vector<1x1x4x8x32xf32> to vector<4x8x32xf32>
    %60 = vector.shape_cast %59 : vector<4x8x32xf32> to vector<32x32xf32>
    %c6 = arith.constant 6 : index
    %c0_52 = arith.constant 0 : index
    %c0_53 = arith.constant 0 : index
    %61 = vector.load %arg3[%c6, %c0_52, %c0_53] : memref<14x32x32xf32, #tpu.memory_space<vmem>>, vector<1x32x32xf32>
    %62 = vector.shape_cast %61 : vector<1x32x32xf32> to vector<32x32xf32>
    %cst_54 = arith.constant dense<0.000000e+00> : vector<32x32xf32>
    %63 = tpu.matmul %60, %62, %cst_54 {dimension_numbers = #tpu.dot_dimension_numbers<[1], [0], [0], [1], [0, 0, 1, 1], [], []>} : vector<32x32xf32>, vector<32x32xf32>, vector<32x32xf32> -> vector<32x32xf32>
    %64 = arith.addf %55, %63 : vector<32x32xf32>
    %c0_i32_55 = arith.constant 0 : i32
    %65 = arith.addi %0, %c0_i32_55 : i32
    %c0_56 = arith.constant 0 : index
    %c3_57 = arith.constant 3 : index
    %66 = arith.index_cast %65 : i32 to index
    %c1_58 = arith.constant 1 : index
    %c0_59 = arith.constant 0 : index
    %67 = vector.load %arg2[%c0_56, %c3_57, %66, %c1_58, %c0_59] : memref<1x4x9x9x32xf32, #tpu.memory_space<vmem>>, vector<1x1x4x8x32xf32>
    %68 = vector.shape_cast %67 : vector<1x1x4x8x32xf32> to vector<4x8x32xf32>
    %69 = vector.shape_cast %68 : vector<4x8x32xf32> to vector<32x32xf32>
    %c7 = arith.constant 7 : index
    %c0_60 = arith.constant 0 : index
    %c0_61 = arith.constant 0 : index
    %70 = vector.load %arg3[%c7, %c0_60, %c0_61] : memref<14x32x32xf32, #tpu.memory_space<vmem>>, vector<1x32x32xf32>
    %71 = vector.shape_cast %70 : vector<1x32x32xf32> to vector<32x32xf32>
    %cst_62 = arith.constant dense<0.000000e+00> : vector<32x32xf32>
    %72 = tpu.matmul %69, %71, %cst_62 {dimension_numbers = #tpu.dot_dimension_numbers<[1], [0], [0], [1], [0, 0, 1, 1], [], []>} : vector<32x32xf32>, vector<32x32xf32>, vector<32x32xf32> -> vector<32x32xf32>
    %73 = arith.addf %64, %72 : vector<32x32xf32>
    %c1_i32 = arith.constant 1 : i32
    %74 = arith.addi %0, %c1_i32 : i32
    %c0_63 = arith.constant 0 : index
    %c0_64 = arith.constant 0 : index
    %75 = arith.index_cast %74 : i32 to index
    %c0_65 = arith.constant 0 : index
    %c0_66 = arith.constant 0 : index
    %76 = vector.load %arg2[%c0_63, %c0_64, %75, %c0_65, %c0_66] : memref<1x4x9x9x32xf32, #tpu.memory_space<vmem>>, vector<1x1x4x8x32xf32>
    %77 = vector.shape_cast %76 : vector<1x1x4x8x32xf32> to vector<4x8x32xf32>
    %78 = vector.shape_cast %77 : vector<4x8x32xf32> to vector<32x32xf32>
    %c8 = arith.constant 8 : index
    %c0_67 = arith.constant 0 : index
    %c0_68 = arith.constant 0 : index
    %79 = vector.load %arg3[%c8, %c0_67, %c0_68] : memref<14x32x32xf32, #tpu.memory_space<vmem>>, vector<1x32x32xf32>
    %80 = vector.shape_cast %79 : vector<1x32x32xf32> to vector<32x32xf32>
    %cst_69 = arith.constant dense<0.000000e+00> : vector<32x32xf32>
    %81 = tpu.matmul %78, %80, %cst_69 {dimension_numbers = #tpu.dot_dimension_numbers<[1], [0], [0], [1], [0, 0, 1, 1], [], []>} : vector<32x32xf32>, vector<32x32xf32>, vector<32x32xf32> -> vector<32x32xf32>
    %82 = arith.addf %73, %81 : vector<32x32xf32>
    %c1_i32_70 = arith.constant 1 : i32
    %83 = arith.addi %0, %c1_i32_70 : i32
    %c0_71 = arith.constant 0 : index
    %c0_72 = arith.constant 0 : index
    %84 = arith.index_cast %83 : i32 to index
    %c1_73 = arith.constant 1 : index
    %c0_74 = arith.constant 0 : index
    %85 = vector.load %arg2[%c0_71, %c0_72, %84, %c1_73, %c0_74] : memref<1x4x9x9x32xf32, #tpu.memory_space<vmem>>, vector<1x1x4x8x32xf32>
    %86 = vector.shape_cast %85 : vector<1x1x4x8x32xf32> to vector<4x8x32xf32>
    %87 = vector.shape_cast %86 : vector<4x8x32xf32> to vector<32x32xf32>
    %c9 = arith.constant 9 : index
    %c0_75 = arith.constant 0 : index
    %c0_76 = arith.constant 0 : index
    %88 = vector.load %arg3[%c9, %c0_75, %c0_76] : memref<14x32x32xf32, #tpu.memory_space<vmem>>, vector<1x32x32xf32>
    %89 = vector.shape_cast %88 : vector<1x32x32xf32> to vector<32x32xf32>
    %cst_77 = arith.constant dense<0.000000e+00> : vector<32x32xf32>
    %90 = tpu.matmul %87, %89, %cst_77 {dimension_numbers = #tpu.dot_dimension_numbers<[1], [0], [0], [1], [0, 0, 1, 1], [], []>} : vector<32x32xf32>, vector<32x32xf32>, vector<32x32xf32> -> vector<32x32xf32>
    %91 = arith.addf %82, %90 : vector<32x32xf32>
    %c1_i32_78 = arith.constant 1 : i32
    %92 = arith.addi %0, %c1_i32_78 : i32
    %c0_79 = arith.constant 0 : index
    %c1_80 = arith.constant 1 : index
    %93 = arith.index_cast %92 : i32 to index
    %c0_81 = arith.constant 0 : index
    %c0_82 = arith.constant 0 : index
    %94 = vector.load %arg2[%c0_79, %c1_80, %93, %c0_81, %c0_82] : memref<1x4x9x9x32xf32, #tpu.memory_space<vmem>>, vector<1x1x4x8x32xf32>
    %95 = vector.shape_cast %94 : vector<1x1x4x8x32xf32> to vector<4x8x32xf32>
    %96 = vector.shape_cast %95 : vector<4x8x32xf32> to vector<32x32xf32>
    %c10 = arith.constant 10 : index
    %c0_83 = arith.constant 0 : index
    %c0_84 = arith.constant 0 : index
    %97 = vector.load %arg3[%c10, %c0_83, %c0_84] : memref<14x32x32xf32, #tpu.memory_space<vmem>>, vector<1x32x32xf32>
    %98 = vector.shape_cast %97 : vector<1x32x32xf32> to vector<32x32xf32>
    %cst_85 = arith.constant dense<0.000000e+00> : vector<32x32xf32>
    %99 = tpu.matmul %96, %98, %cst_85 {dimension_numbers = #tpu.dot_dimension_numbers<[1], [0], [0], [1], [0, 0, 1, 1], [], []>} : vector<32x32xf32>, vector<32x32xf32>, vector<32x32xf32> -> vector<32x32xf32>
    %100 = arith.addf %91, %99 : vector<32x32xf32>
    %c1_i32_86 = arith.constant 1 : i32
    %101 = arith.addi %0, %c1_i32_86 : i32
    %c0_87 = arith.constant 0 : index
    %c1_88 = arith.constant 1 : index
    %102 = arith.index_cast %101 : i32 to index
    %c1_89 = arith.constant 1 : index
    %c0_90 = arith.constant 0 : index
    %103 = vector.load %arg2[%c0_87, %c1_88, %102, %c1_89, %c0_90] : memref<1x4x9x9x32xf32, #tpu.memory_space<vmem>>, vector<1x1x4x8x32xf32>
    %104 = vector.shape_cast %103 : vector<1x1x4x8x32xf32> to vector<4x8x32xf32>
    %105 = vector.shape_cast %104 : vector<4x8x32xf32> to vector<32x32xf32>
    %c11 = arith.constant 11 : index
    %c0_91 = arith.constant 0 : index
    %c0_92 = arith.constant 0 : index
    %106 = vector.load %arg3[%c11, %c0_91, %c0_92] : memref<14x32x32xf32, #tpu.memory_space<vmem>>, vector<1x32x32xf32>
    %107 = vector.shape_cast %106 : vector<1x32x32xf32> to vector<32x32xf32>
    %cst_93 = arith.constant dense<0.000000e+00> : vector<32x32xf32>
    %108 = tpu.matmul %105, %107, %cst_93 {dimension_numbers = #tpu.dot_dimension_numbers<[1], [0], [0], [1], [0, 0, 1, 1], [], []>} : vector<32x32xf32>, vector<32x32xf32>, vector<32x32xf32> -> vector<32x32xf32>
    %109 = arith.addf %100, %108 : vector<32x32xf32>
    %c1_i32_94 = arith.constant 1 : i32
    %110 = arith.addi %0, %c1_i32_94 : i32
    %c0_95 = arith.constant 0 : index
    %c2_96 = arith.constant 2 : index
    %111 = arith.index_cast %110 : i32 to index
    %c0_97 = arith.constant 0 : index
    %c0_98 = arith.constant 0 : index
    %112 = vector.load %arg2[%c0_95, %c2_96, %111, %c0_97, %c0_98] : memref<1x4x9x9x32xf32, #tpu.memory_space<vmem>>, vector<1x1x4x8x32xf32>
    %113 = vector.shape_cast %112 : vector<1x1x4x8x32xf32> to vector<4x8x32xf32>
    %114 = vector.shape_cast %113 : vector<4x8x32xf32> to vector<32x32xf32>
    %c12 = arith.constant 12 : index
    %c0_99 = arith.constant 0 : index
    %c0_100 = arith.constant 0 : index
    %115 = vector.load %arg3[%c12, %c0_99, %c0_100] : memref<14x32x32xf32, #tpu.memory_space<vmem>>, vector<1x32x32xf32>
    %116 = vector.shape_cast %115 : vector<1x32x32xf32> to vector<32x32xf32>
    %cst_101 = arith.constant dense<0.000000e+00> : vector<32x32xf32>
    %117 = tpu.matmul %114, %116, %cst_101 {dimension_numbers = #tpu.dot_dimension_numbers<[1], [0], [0], [1], [0, 0, 1, 1], [], []>} : vector<32x32xf32>, vector<32x32xf32>, vector<32x32xf32> -> vector<32x32xf32>
    %118 = arith.addf %109, %117 : vector<32x32xf32>
    %c1_i32_102 = arith.constant 1 : i32
    %119 = arith.addi %0, %c1_i32_102 : i32
    %c0_103 = arith.constant 0 : index
    %c2_104 = arith.constant 2 : index
    %120 = arith.index_cast %119 : i32 to index
    %c1_105 = arith.constant 1 : index
    %c0_106 = arith.constant 0 : index
    %121 = vector.load %arg2[%c0_103, %c2_104, %120, %c1_105, %c0_106] : memref<1x4x9x9x32xf32, #tpu.memory_space<vmem>>, vector<1x1x4x8x32xf32>
    %122 = vector.shape_cast %121 : vector<1x1x4x8x32xf32> to vector<4x8x32xf32>
    %123 = vector.shape_cast %122 : vector<4x8x32xf32> to vector<32x32xf32>
    %c13 = arith.constant 13 : index
    %c0_107 = arith.constant 0 : index
    %c0_108 = arith.constant 0 : index
    %124 = vector.load %arg3[%c13, %c0_107, %c0_108] : memref<14x32x32xf32, #tpu.memory_space<vmem>>, vector<1x32x32xf32>
    %125 = vector.shape_cast %124 : vector<1x32x32xf32> to vector<32x32xf32>
    %cst_109 = arith.constant dense<0.000000e+00> : vector<32x32xf32>
    %126 = tpu.matmul %123, %125, %cst_109 {dimension_numbers = #tpu.dot_dimension_numbers<[1], [0], [0], [1], [0, 0, 1, 1], [], []>} : vector<32x32xf32>, vector<32x32xf32>, vector<32x32xf32> -> vector<32x32xf32>
    %127 = arith.addf %118, %126 : vector<32x32xf32>
    %c0_110 = arith.constant 0 : index
    %c0_111 = arith.constant 0 : index
    %128 = vector.load %arg4[%c0_110, %c0_111] : memref<1x32xf32, #tpu.memory_space<vmem>>, vector<1x32xf32>
    %129 = vector.broadcast %128 : vector<1x32xf32> to vector<32x32xf32>
    %130 = arith.addf %127, %129 : vector<32x32xf32>
    %cst_112 = arith.constant dense<0.000000e+00> : vector<32xf32>
    %131 = vector.multi_reduction <add>, %130, %cst_112 [1] : vector<32x32xf32> to vector<32xf32>
    %132 = vector.shape_cast %131 : vector<32xf32> to vector<32x1xf32>
    %cst_113 = arith.constant 3.200000e+01 : f32
    %133 = vector.broadcast %cst_113 : f32 to vector<32x1xf32>
    %134 = arith.divf %132, %133 : vector<32x1xf32>
    %135 = vector.broadcast %134 : vector<32x1xf32> to vector<32x32xf32>
    %136 = arith.subf %130, %135 : vector<32x32xf32>
    %137 = arith.mulf %136, %136 : vector<32x32xf32>
    %cst_114 = arith.constant dense<0.000000e+00> : vector<32xf32>
    %138 = vector.multi_reduction <add>, %137, %cst_114 [1] : vector<32x32xf32> to vector<32xf32>
    %139 = vector.shape_cast %138 : vector<32xf32> to vector<32x1xf32>
    %cst_115 = arith.constant 3.200000e+01 : f32
    %140 = vector.broadcast %cst_115 : f32 to vector<32x1xf32>
    %141 = arith.divf %139, %140 : vector<32x1xf32>
    %cst_116 = arith.constant 9.99999974E-6 : f32
    %142 = vector.broadcast %cst_116 : f32 to vector<32x1xf32>
    %143 = arith.addf %141, %142 : vector<32x1xf32>
    %144 = math.rsqrt %143 : vector<32x1xf32>
    %145 = vector.broadcast %144 : vector<32x1xf32> to vector<32x32xf32>
    %146 = arith.mulf %136, %145 : vector<32x32xf32>
    %c0_117 = arith.constant 0 : index
    %c0_118 = arith.constant 0 : index
    %147 = vector.load %arg5[%c0_117, %c0_118] : memref<1x32xf32, #tpu.memory_space<vmem>>, vector<1x32xf32>
    %148 = vector.broadcast %147 : vector<1x32xf32> to vector<32x32xf32>
    %149 = arith.mulf %146, %148 : vector<32x32xf32>
    %c0_119 = arith.constant 0 : index
    %c0_120 = arith.constant 0 : index
    %150 = vector.load %arg6[%c0_119, %c0_120] : memref<1x32xf32, #tpu.memory_space<vmem>>, vector<1x32xf32>
    %151 = vector.broadcast %150 : vector<1x32xf32> to vector<32x32xf32>
    %152 = arith.addf %149, %151 : vector<32x32xf32>
    %c0_121 = arith.constant 0 : index
    %c0_122 = arith.constant 0 : index
    %c0_123 = arith.constant 0 : index
    %153 = vector.load %arg7[%c0_121, %c0_122, %c0_123] : memref<1x32x32xf32, #tpu.memory_space<vmem>>, vector<1x32x32xf32>
    %154 = vector.shape_cast %153 : vector<1x32x32xf32> to vector<32x32xf32>
    %155 = vector.shape_cast %152 : vector<32x32xf32> to vector<1x32x32xf32>
    tpu.vector_store %arg7[%c0_121, %c0_122, %c0_123], %155 {strides = array<i32>} : memref<1x32x32xf32, #tpu.memory_space<vmem>>, vector<1x32x32xf32>,
    return
  }
  func.func @transform_0(%arg0: i32, %arg1: i32) -> (i32, i32, i32, i32, i32) {
    %c0_i32 = arith.constant 0 : i32
    %c0_i32_0 = arith.constant 0 : i32
    %c0_i32_1 = arith.constant 0 : i32
    %c0_i32_2 = arith.constant 0 : i32
    %c0_i32_3 = arith.constant 0 : i32
    return %arg0, %c0_i32, %c0_i32_0, %c0_i32_1, %c0_i32_2 : i32, i32, i32, i32, i32
  }
  func.func @transform_1(%arg0: i32, %arg1: i32) -> (i32, i32, i32) {
    %c0_i32 = arith.constant 0 : i32
    %c0_i32_0 = arith.constant 0 : i32
    %c0_i32_1 = arith.constant 0 : i32
    %c0_i32_2 = arith.constant 0 : i32
    return %c0_i32, %c0_i32_0, %c0_i32_1 : i32, i32, i32
  }
  func.func @transform_2(%arg0: i32, %arg1: i32) -> (i32, i32) {
    %c0_i32 = arith.constant 0 : i32
    %c0_i32_0 = arith.constant 0 : i32
    %c0_i32_1 = arith.constant 0 : i32
    return %c0_i32, %c0_i32_0 : i32, i32
  }
  func.func @transform_3(%arg0: i32, %arg1: i32) -> (i32, i32) {
    %c0_i32 = arith.constant 0 : i32
    %c0_i32_0 = arith.constant 0 : i32
    %c0_i32_1 = arith.constant 0 : i32
    return %c0_i32, %c0_i32_0 : i32, i32
  }
  func.func @transform_4(%arg0: i32, %arg1: i32) -> (i32, i32) {
    %c0_i32 = arith.constant 0 : i32
    %c0_i32_0 = arith.constant 0 : i32
    %c0_i32_1 = arith.constant 0 : i32
    return %c0_i32, %c0_i32_0 : i32, i32
  }
  func.func @transform_5(%arg0: i32, %arg1: i32) -> (i32, i32, i32) {
    %c0_i32 = arith.constant 0 : i32
    %c0_i32_0 = arith.constant 0 : i32
    return %arg0, %arg1, %c0_i32 : i32, i32, i32
  }
}

</mosaic_0001>

<bundles_post_ra>
// kernel: tpu_custom_call.1
= control target key start
LH: loop header
LB: loop body
LE: loop exit
PB: predicated region body
PF: predicated region fallthrough
CT: control target
= control target key end

     0   :  { %s1558_s18 = smov 0   ;;  %s1560_s19 = smov 0   ;;  %s1975_s0 = inlined_call_operand.vmem [shape: f32[2,4,9,9,32], index: 0, kind: input, shape index: {}]   ;;  %s1976_s1 = inlined_call_operand.vmem [shape: f32[14,32,32], index: 1, kind: input, shape index: {}]   ;;  %s1977_s2 = inlined_call_operand.vmem [shape: f32[1,32], index: 2, kind: input, shape index: {}]   ;;  %s1978_s3 = inlined_call_operand.vmem [shape: f32[1,32], index: 3, kind: input, shape index: {}]   ;;  %s1979_s4 = inlined_call_operand.vmem [shape: f32[1,32], index: 4, kind: input, shape index: {}]   ;;  %s1980_s5 = inlined_call_operand.vmem [shape: f32[2,64,32], index: 5, kind: output, shape index: {}]  }
   0x1   :  { %s1562_s20 = smov 0   ;;  %s1564_s21 = smov 0  }
   0x2   :  { %s1566_s22 = smov 0  }
   0x3 LB: > { %s24_s23 = sadd.s32 1, %s1517_s20  ;;  %s27_s24 = sadd.s32 1, %s1521_s21  ;;  %s1525_s22 = sphi %s1566_s22, %s15_s22   ;;  %s1521_s21 = sphi %s1564_s21, %s1984_s21   ;;  %s1517_s20 = sphi %s1562_s20, %s1983_s20   ;;  %s1513_s19 = sphi %s1560_s19, %s1982_s19   ;;  %s1509_s18 = sphi %s1558_s18, %s1981_s18  }
   0x4   : > { %p25_p0 = scmp.ge.s32.totalorder %s24_s23, 2  ;;  %p1246_p1 = scmp.ge.s32.totalorder %s1525_s22, 1 }
   0x5   : > { %p201_p2 = scmp.lt.s32.totalorder %s1525_s22, 5 }
   0x6   : > { %s1986_s23 = smov (%p25_p0, %s24_s23), 0  ;;  %s1988_s24 = smov (!%p25_p0, %s27_s24), %s1521_s21 }
   0x7   : > { %p202_p3 = pnand %p1246_p1, %p201_p2  ;;  %p29_p4 = scmp.ge.s32.totalorder %s1988_s24, 2 }
   0x8   : > { %p233_p5 = scmp.lt.s32.totalorder (!%p202_p3), %s1513_s19, 1  ;;  %s1420_s17 = sshll.u32 (!%p202_p3), %s1509_s18, 6 }
   0x9   : > { %s1990_s24 = smov (%p29_p4, %s1988_s24), 0  ;;  %205 = sbr.rel (%p202_p3) target bundleno = 538 (0x21a), region = 40 }
   0xe   : > { %v1256_v0 = vld [vmem:[%s1976_s1 + $0x38] sm:$0xff]  ;;  %v1255_v2 = vld [vmem:[%s1976_s1 + $0x30] sm:$0xff]  ;;  %v1254_v4 = vld [vmem:[%s1976_s1 + $0x28] sm:$0xff]  ;;  %s1992_s19 = smov (!%p233_p5, %s1513_s19), 1  ;;  %vm268_vm0 = vcmask 261120  }
   0xf   : > { %v258_v1 = vld [vmem:[%s1976_s1 + $0x18] sm:$0xff]  ;;  %1424 = vmatpush.msra.mxu2 %v1256_v0  ;;  %v257_v3 = vld [vmem:[%s1976_s1 + $0x10] sm:$0xff]  ;;  %v256_v5 = vld [vmem:[%s1976_s1 + $0x8] sm:$0xff]  ;;  %293 = vmatpush.msra.mxu0 %v1256_v0  ;;  %s1432_s16 = smul.u32 576, %s1992_s19 }
  0x10   : > { %1428 = vmatpush.msra.mxu3 %v258_v1  ;;  %334 = vmatpush.msra.mxu1 %v258_v1  ;;  %v1253_v6 = vld [vmem:[%s1976_s1 + $0x20] sm:$0xff]  ;;  %v1273_v8 = vld [vmem:[%s1976_s1 + $0x58] sm:$0xff]  ;;  %v1272_v10 = vld [vmem:[%s1976_s1 + $0x50] sm:$0xff] }
  0x11   : > { %1425 = vmatpush.msra.mxu2 %v1255_v2  ;;  %v255_v7 = vld [vmem:[%s1976_s1] sm:$0xff]  ;;  %294 = vmatpush.msra.mxu0 %v1255_v2  ;;  %v1285_v9 = vld [vmem:[%s1976_s1 + $0x78] sm:$0xff]  ;;  %s237_s6 = scalar_lea.vmem %s1975_s0, %s1432_s16  ;;  %v1284_v11 = vld [vmem:[%s1976_s1 + $0x70] sm:$0xff]  ;;  %s1248_s16 = sshll.u32 %s1509_s18, 2 }
  0x12   : > { %1429 = vmatpush.msra.mxu3 %v257_v3  ;;  %335 = vmatpush.msra.mxu1 %v257_v3  ;;  %s1627_s7 = scalar_lea.vmem %s237_s6, %s1420_s17  ;;  %v1271_v14 = vld [vmem:[%s1976_s1 + $0x48] sm:$0xff]  ;;  %v1298_v18 = vld [vmem:[%s1976_s1 + $0x98] sm:$0xff]  ;;  %v1270_v19 = vld [vmem:[%s1976_s1 + $0x40] sm:$0xff]  ;;  %p241_p6 = scmp.lt.s32.totalorder %s1248_s16, 7 }
  0x13   : > { %1426 = vmatpush.msra.mxu2 %v1254_v4  ;;  %295 = vmatpush.msra.mxu0 %v1254_v4  ;;  %v1636_v12 = vld [vmem:[%s1627_s7 + $0x21] sm:$0xff]  ;;  %v1310_v20 = vld [vmem:[%s1976_s1 + $0xb8] sm:$0xff]  ;;  %v1297_v22 = vld [vmem:[%s1976_s1 + $0x90] sm:$0xff]  ;;  %s1249_s17 = sshll.u32 %s1992_s19, 3 }
  0x14   : > { %1430 = vmatpush.msra.mxu3 %v256_v5  ;;  %336 = vmatpush.msra.mxu1 %v256_v5  ;;  %v1639_v13 = vld [vmem:[%s1627_s7 + $0x20] sm:$0xff]  ;;  %v1283_v17 = vld [vmem:[%s1976_s1 + $0x68] sm:$0xff]  ;;  %v1323_v23 = vld [vmem:[%s1976_s1 + $0xd8] sm:$0xff]  ;;  %s1994_s16 = smov (!%p241_p6, %s1248_s16), 7 }
  0x15   : > { %1427 = vmatpush.msra.mxu2 %v1253_v6  ;;  %v259_v15 = vld [vmem:[%s1627_s7 + $0x1] sm:$0xff]  ;;  %296 = vmatpush.msra.mxu0 %v1253_v6  ;;  %v1674_v24 = vld [vmem:[%s1627_s7 + $0x31] sm:$0xff]  ;;  %s244_s25 = sadd.s32 %s1249_s17, %s1994_s16 }
  0x16   : > { %1431 = vmatpush.msra.mxu3 %v255_v7  ;;  %1259 = vmatmul.msk.f32.vlgmr.msra.gmra.mxu2 %vm268_vm0, %v1636_v12  ;;  %v251_v16 = vld [vmem:[%s1627_s7] sm:$0xff]  ;;  %v1677_v25 = vld [vmem:[%s1627_s7 + $0x30] sm:$0xff]  ;;  %v1296_v27 = vld [vmem:[%s1976_s1 + $0x88] sm:$0xff]  ;;  %s1250_s27 = sshll.u32 %s244_s25, 3 }
  0x17   : > { %386 = vmatpush.msrb.mxu2 %v1273_v8  ;;  %1263 = vmatmul.msk.f32.vlgmr.msra.gmra.mxu3 %vm268_vm0, %v1639_v13  ;;  %v1282_v21 = vld [vmem:[%s1976_s1 + $0x60] sm:$0xff]  ;;  %v1309_v26 = vld [vmem:[%s1976_s1 + $0xb0] sm:$0xff]  ;;  %v1335_v28 = vld [vmem:[%s1976_s1 + $0xf8] sm:$0xff]  ;;  %s1947_s6 = scalar_lea.vmem %s1980_s5, %s1250_s27 }
  0x18   : > { %440 = vmatpush.msrb.mxu3 %v1285_v9  ;;  %337 = vmatpush.msra.mxu1 %v255_v7  ;;  %v1322_v29 = vld [vmem:[%s1976_s1 + $0xd0] sm:$0xff]  ;;  %v1308_v31 = vld [vmem:[%s1976_s1 + $0xa8] sm:$0xff]  ;;  %v1295_v33 = vld [vmem:[%s1976_s1 + $0x80] sm:$0xff] }
  0x19   : > { %387 = vmatpush.msrb.mxu2 %v1272_v10  ;;  %1257 = vmatmul.msk.f32.vlgmr.msra.gmra.mxu0 %vm268_vm0, %v259_v15  ;;  %v1696_v30 = vld [vmem:[%s1627_s7 + $0x11] sm:$0xff]  ;;  %v1307_v34 = vld [vmem:[%s1976_s1 + $0xa0] sm:$0xff]  ;;  %v1321_v38 = vld [vmem:[%s1976_s1 + $0xc8] sm:$0xff] }
  0x1a   : > { %441 = vmatpush.msrb.mxu3 %v1284_v11  ;;  %1261 = vmatmul.msk.f32.vlgmr.msra.gmra.mxu1 %vm268_vm0, %v251_v16  ;;  %v1702_v32 = vld [vmem:[%s1627_s7 + $0x10] sm:$0xff]  ;;  %v1349_v36 = vld [vmem:[%s1976_s1 + $0x118] sm:$0xff]  ;;  %v1333_v39 = vld [vmem:[%s1976_s1 + $0xe8] sm:$0xff] }
  0x1b   : > { %388 = vmatpush.msrb.mxu2 %v1271_v14  ;;  %496 = vmatpush.msrb.mxu0 %v1298_v18  ;;  %v1334_v35 = vld [vmem:[%s1976_s1 + $0xf0] sm:$0xff]  ;;  %v1361_v37 = vld [vmem:[%s1976_s1 + $0x138] sm:$0xff]  ;;  %v1320_v44 = vld [vmem:[%s1976_s1 + $0xc0] sm:$0xff] }
  0x1c   : > { %442 = vmatpush.msrb.mxu3 %v1283_v17  ;;  %550 = vmatpush.msrb.mxu1 %v1310_v20  ;;  %v1266_v40 = vld [vmem:[%s1627_s7 + $0x90] sm:$0xff]  ;;  %v1332_v45 = vld [vmem:[%s1976_s1 + $0xe0] sm:$0xff]  ;;  %v1359_v47 = vld [vmem:[%s1976_s1 + $0x128] sm:$0xff] }
  0x1d   : > { %389 = vmatpush.msrb.mxu2 %v1270_v19  ;;  %497 = vmatpush.msrb.mxu0 %v1297_v22  ;;  %v1278_v41 = vld [vmem:[%s1627_s7 + $0x91] sm:$0xff]  ;;  %v1291_v46 = vld [vmem:[%s1627_s7 + $0x120] sm:$0xff]  ;;  %v1347_v49 = vld [vmem:[%s1976_s1 + $0x108] sm:$0xff] }
  0x1e   : > { %443 = vmatpush.msrb.mxu3 %v1282_v21  ;;  %1260 = vmatmul.msk.f32.gmra.mxu2 %vm268_vm0, %v1674_v24  ;;  %v1348_v42 = vld [vmem:[%s1976_s1 + $0x110] sm:$0xff]  ;;  %v1303_v48 = vld [vmem:[%s1627_s7 + $0x121] sm:$0xff]  ;;  %v1375_v50 = vld [vmem:[%s1976_s1 + $0x158] sm:$0xff] }
  0x1f   : > { %606 = vmatpush.msra.mxu2 %v1323_v23  ;;  %1264 = vmatmul.msk.f32.gmra.mxu3 %vm268_vm0, %v1677_v25  ;;  %v1360_v43 = vld [vmem:[%s1976_s1 + $0x130] sm:$0xff]  ;;  %v1387_v51 = vld [vmem:[%s1976_s1 + $0x178] sm:$0xff]  ;;  %v1346_v52 = vld [vmem:[%s1976_s1 + $0x100] sm:$0xff] }
  0x20   : > { %551 = vmatpush.msrb.mxu1 %v1309_v26  ;;  %498 = vmatpush.msrb.mxu0 %v1296_v27  ;;  %v1358_v53 = vld [vmem:[%s1976_s1 + $0x120] sm:$0xff]  ;;  %v1778_v56 = vld [vmem:[%s1627_s7 + $0x130] sm:$0xff]  ;;  %v1401_v60 = vld [vmem:[%s1976_s1 + $0x198] sm:$0xff] }
  0x21   : > { %660 = vmatpush.msra.mxu3 %v1335_v28  ;;  %607 = vmatpush.msra.mxu2 %v1322_v29  ;;  %v1768_v54 = vld [vmem:[%s1627_s7 + $0xa0] sm:$0xff]  ;;  %v1374_v57 = vld [vmem:[%s1976_s1 + $0x150] sm:$0xff]  ;;  %v1413_v61 = vld [vmem:[%s1976_s1 + $0x1b8] sm:$0xff] }
  0x22   : > { %1258 = vmatmul.msk.f32.gmra.mxu0 %vm268_vm0, %v1696_v30  ;;  %552 = vmatpush.msrb.mxu1 %v1308_v31  ;;  %v1771_v55 = vld [vmem:[%s1627_s7 + $0xa1] sm:$0xff]  ;;  %v1386_v58 = vld [vmem:[%s1976_s1 + $0x170] sm:$0xff] }
  0x23   : > { %1262 = vmatmul.msk.f32.gmra.mxu1 %vm268_vm0, %v1702_v32  ;;  %499 = vmatpush.msrb.mxu0 %v1295_v33  ;;  %v1787_v59 = vld [vmem:[%s1627_s7 + $0x131] sm:$0xff]  ;;  %v1810_v0 = vld [vmem:[%s1627_s7 + $0x140] sm:$0xff]  ;;  %v1373_v1 = vld [vmem:[%s1976_s1 + $0x148] sm:$0xff] }
  0x24   : > { %553 = vmatpush.msrb.mxu1 %v1307_v34  ;;  %661 = vmatpush.msra.mxu3 %v1334_v35  ;;  %v1800_v62 = vld [vmem:[%s1627_s7 + $0xb0] sm:$0xff]  ;;  %v1385_v2 = vld [vmem:[%s1976_s1 + $0x168] sm:$0xff]  ;;  %v1269_v6 = vld [vmem:[%s1627_s7 + $0xc0] sm:$0xff] }
  0x25   : > { %717 = vmatpush.msra.mxu0 %v1349_v36  ;;  %608 = vmatpush.msra.mxu2 %v1321_v38  ;;  %v1803_v63 = vld [vmem:[%s1627_s7 + $0xb1] sm:$0xff]  ;;  %v1305_v3 = vld [vmem:[%s1627_s7 + $0x141] sm:$0xff] }
  0x26   : > { %771 = vmatpush.msra.mxu1 %v1361_v37  ;;  %662 = vmatpush.msra.mxu3 %v1333_v39  ;;  %v1400_v4 = vld [vmem:[%s1976_s1 + $0x190] sm:$0xff]  ;;  %v1281_v7 = vld [vmem:[%s1627_s7 + $0xc1] sm:$0xff] }
  0x27   : > { %1274 = vmatmul.msk.f32.vlgmr.msrb.gmra.mxu2 %vm268_vm0, %v1266_v40  ;;  %1286 = vmatmul.msk.f32.vlgmr.msrb.gmra.mxu3 %vm268_vm0, %v1278_v41  ;;  %v1412_v5 = vld [vmem:[%s1976_s1 + $0x1b0] sm:$0xff]  ;;  %v1372_v9 = vld [vmem:[%s1976_s1 + $0x140] sm:$0xff]  ;;  %v1399_v14 = vld [vmem:[%s1976_s1 + $0x188] sm:$0xff] }
  0x28   : > { %718 = vmatpush.msra.mxu0 %v1348_v42  ;;  %772 = vmatpush.msra.mxu1 %v1360_v43  ;;  %v1294_v8 = vld [vmem:[%s1627_s7 + $0x150] sm:$0xff]  ;;  %v1384_v10 = vld [vmem:[%s1976_s1 + $0x160] sm:$0xff]  ;;  %v1411_v15 = vld [vmem:[%s1976_s1 + $0x1a8] sm:$0xff] }
  0x29   : > { %609 = vmatpush.msra.mxu2 %v1320_v44  ;;  %663 = vmatpush.msra.mxu3 %v1332_v45  ;;  %v1306_v11 = vld [vmem:[%s1627_s7 + $0x151] sm:$0xff]  ;;  %v1398_v18 = vld [vmem:[%s1976_s1 + $0x180] sm:$0xff] }
  0x2a   : > { %1299 = vmatmul.msk.f32.vlgmr.msrb.gmra.mxu0 %vm268_vm0, %v1291_v46  ;;  %773 = vmatpush.msra.mxu1 %v1359_v47  ;;  %v1316_v16 = vld [vmem:[%s1627_s7 + $0x1b0] sm:$0xff]  ;;  %v1410_v19 = vld [vmem:[%s1976_s1 + $0x1a0] sm:$0xff] }
  0x2b   : > { %1311 = vmatmul.msk.f32.vlgmr.msrb.gmra.mxu1 %vm268_vm0, %v1303_v48  ;;  %719 = vmatpush.msra.mxu0 %v1347_v49  ;;  %v1328_v17 = vld [vmem:[%s1627_s7 + $0x1b1] sm:$0xff]  ;;  %v1317_v20 = vld [vmem:[%s1627_s7 + $0x1c0] sm:$0xff] }
  0x2c   : > { %827 = vmatpush.msrb.mxu2 %v1375_v50  ;;  %881 = vmatpush.msrb.mxu3 %v1387_v51  ;;  %v1329_v21 = vld [vmem:[%s1627_s7 + $0x1c1] sm:$0xff]  ;;  %v1318_v22 = vld [vmem:[%s1627_s7 + $0x1d0] sm:$0xff] }
  0x2d   : > { %720 = vmatpush.msra.mxu0 %v1346_v52  ;;  %774 = vmatpush.msra.mxu1 %v1358_v53  ;;  %v1330_v23 = vld [vmem:[%s1627_s7 + $0x1d1] sm:$0xff]  ;;  %v1319_v26 = vld [vmem:[%s1627_s7 + $0x1e0] sm:$0xff] }
  0x2e   : > { %828 = vmatpush.msrb.mxu2 %v1374_v57  ;;  %882 = vmatpush.msrb.mxu3 %v1386_v58  ;;  %v1331_v27 = vld [vmem:[%s1627_s7 + $0x1e1] sm:$0xff] }
  0x2f   : > { %1275 = vmatmul.msk.f32.gmra.mxu2 %vm268_vm0, %v1768_v54  ;;  %1287 = vmatmul.msk.f32.gmra.mxu3 %vm268_vm0, %v1771_v55  ;;  %v1397_v28 = vld [vmem:[%s1627_s7 + $0x160] sm:$0xff] }
  0x30   : > { %937 = vmatpush.msrb.mxu0 %v1401_v60  ;;  %991 = vmatpush.msrb.mxu1 %v1413_v61  ;;  %v1409_v29 = vld [vmem:[%s1627_s7 + $0x161] sm:$0xff] }
  0x31   : > { %829 = vmatpush.msrb.mxu2 %v1373_v1  ;;  %883 = vmatpush.msrb.mxu3 %v1385_v2 }
  0x32   : > { %1300 = vmatmul.msk.f32.gmra.mxu0 %vm268_vm0, %v1778_v56  ;;  %992 = vmatpush.msrb.mxu1 %v1412_v5 }
  0x33   : > { %1312 = vmatmul.msk.f32.gmra.mxu1 %vm268_vm0, %v1787_v59  ;;  %938 = vmatpush.msrb.mxu0 %v1400_v4 }
  0x34   : > { %830 = vmatpush.msrb.mxu2 %v1372_v9  ;;  %884 = vmatpush.msrb.mxu3 %v1384_v10 }
  0x35   : > { %939 = vmatpush.msrb.mxu0 %v1399_v14  ;;  %993 = vmatpush.msrb.mxu1 %v1411_v15 }
  0x37   : > { %1276 = vmatmul.msk.f32.gmra.mxu2 %vm268_vm0, %v1800_v62  ;;  %1288 = vmatmul.msk.f32.gmra.mxu3 %vm268_vm0, %v1803_v63 }
  0x38   : > { %940 = vmatpush.msrb.mxu0 %v1398_v18  ;;  %994 = vmatpush.msrb.mxu1 %v1410_v19 }
  0x3a   : > { %1301 = vmatmul.msk.f32.gmra.mxu0 %vm268_vm0, %v1810_v0 }
  0x3b   : > { %1313 = vmatmul.msk.f32.gmra.mxu1 %vm268_vm0, %v1305_v3 }
  0x3f   : > { %1277 = vmatmul.msk.f32.gmra.mxu2 %vm268_vm0, %v1269_v6  ;;  %1289 = vmatmul.msk.f32.gmra.mxu3 %vm268_vm0, %v1281_v7 }
  0x42   : > { %1302 = vmatmul.msk.f32.gmra.mxu0 %vm268_vm0, %v1294_v8 }
  0x43   : > { %1314 = vmatmul.msk.f32.gmra.mxu1 %vm268_vm0, %v1306_v11 }
  0x47   : > { %1324 = vmatmul.msk.f32.vlgmr.msra.gmra.mxu2 %vm268_vm0, %v1316_v16  ;;  %1336 = vmatmul.msk.f32.vlgmr.msra.gmra.mxu3 %vm268_vm0, %v1328_v17 }
  0x4a   : > { %1350 = vmatmul.msk.f32.vlgmr.msra.gmra.mxu0 %vm268_vm0, %v1702_v32 }
  0x4b   : > { %1362 = vmatmul.msk.f32.vlgmr.msra.gmra.mxu1 %vm268_vm0, %v1696_v30 }
  0x4f   : > { %1325 = vmatmul.msk.f32.gmra.mxu2 %vm268_vm0, %v1317_v20  ;;  %1337 = vmatmul.msk.f32.gmra.mxu3 %vm268_vm0, %v1329_v21 }
  0x52   : > { %1351 = vmatmul.msk.f32.gmra.mxu0 %vm268_vm0, %v1639_v13  ;;  %v1345_v13 = vld [vmem:[%s1627_s7 + $0x40] sm:$0xff] }
  0x53   : > { %1363 = vmatmul.msk.f32.gmra.mxu1 %vm268_vm0, %v1636_v12  ;;  %v1357_v12 = vld [vmem:[%s1627_s7 + $0x41] sm:$0xff] }
  0x57   : > { %1326 = vmatmul.msk.f32.gmra.mxu2 %vm268_vm0, %v1318_v22  ;;  %1338 = vmatmul.msk.f32.gmra.mxu3 %vm268_vm0, %v1330_v23 }
  0x5a   : > { %1352 = vmatmul.msk.f32.gmra.mxu0 %vm268_vm0, %v1677_v25  ;;  %v1383_v25 = vld [vmem:[%s1627_s7 + $0xd1] sm:$0xff] }
  0x5b   : > { %1364 = vmatmul.msk.f32.gmra.mxu1 %vm268_vm0, %v1674_v24  ;;  %v1371_v24 = vld [vmem:[%s1627_s7 + $0xd0] sm:$0xff] }
  0x5f   : > { %1327 = vmatmul.msk.f32.gmra.mxu2 %vm268_vm0, %v1319_v26  ;;  %1339 = vmatmul.msk.f32.gmra.mxu3 %vm268_vm0, %v1331_v27 }
  0x62   : > { %1353 = vmatmul.msk.f32.gmra.mxu0 %vm268_vm0, %v1345_v13 }
  0x63   : > { %1365 = vmatmul.msk.f32.gmra.mxu1 %vm268_vm0, %v1357_v12 }
  0x67   : > { %1376 = vmatmul.msk.f32.vlgmr.msrb.gmra.mxu2 %vm268_vm0, %v1768_v54  ;;  %1388 = vmatmul.msk.f32.vlgmr.msrb.gmra.mxu3 %vm268_vm0, %v1771_v55 }
  0x6a   : > { %1402 = vmatmul.msk.f32.vlgmr.msrb.gmra.mxu0 %vm268_vm0, %v1778_v56 }
  0x6b   : > { %1414 = vmatmul.msk.f32.vlgmr.msrb.gmra.mxu1 %vm268_vm0, %v1787_v59 }
  0x6f   : > { %1377 = vmatmul.msk.f32.gmra.mxu2 %vm268_vm0, %v1800_v62  ;;  %1389 = vmatmul.msk.f32.gmra.mxu3 %vm268_vm0, %v1803_v63 }
  0x72   : > { %1403 = vmatmul.msk.f32.gmra.mxu0 %vm268_vm0, %v1810_v0 }
  0x73   : > { %1415 = vmatmul.msk.f32.gmra.mxu1 %vm268_vm0, %v1305_v3 }
  0x77   : > { %1378 = vmatmul.msk.f32.gmra.mxu2 %vm268_vm0, %v1269_v6  ;;  %1390 = vmatmul.msk.f32.gmra.mxu3 %vm268_vm0, %v1281_v7 }
  0x7a   : > { %1404 = vmatmul.msk.f32.gmra.mxu0 %vm268_vm0, %v1294_v8 }
  0x7b   : > { %1416 = vmatmul.msk.f32.gmra.mxu1 %vm268_vm0, %v1306_v11 }
  0x7f   : > { %1379 = vmatmul.msk.f32.gmra.mxu2 %vm268_vm0, %v1371_v24  ;;  %1391 = vmatmul.msk.f32.gmra.mxu3 %vm268_vm0, %v1383_v25 }
  0x82   : > { %1405 = vmatmul.msk.f32.gmra.mxu0 %vm268_vm0, %v1397_v28 }
  0x83   : > { %1417 = vmatmul.msk.f32.gmra.mxu1 %vm268_vm0, %v1409_v29 }
  0x96   : > { %v298_v30 = vpop.f32.mrf.mxu0 }
  0x97   : > { %v339_v31 = vpop.f32.mrf.mxu1 }
  0x98   : > { %v340_v60 = vadd.f32 %v339_v31, %v298_v30 }
  0x99   : > { %v304_v32 = vpop.f32.mrf.mxu2 }
  0x9a   : > { %v345_v33 = vpop.f32.mrf.mxu3 }
  0x9b   : > { %v346_v34 = vadd.f32 %v345_v33, %v304_v32 }
  0x9f   : > { %v301_v35 = vpop.f32.mrf.mxu0 }
  0xa0   : > { %v342_v36 = vpop.f32.mrf.mxu1 }
  0xa1   : > { %v307_v37 = vpop.f32.mrf.mxu2  ;;  %v343_v3 = vadd.f32 %v342_v36, %v301_v35 }
  0xa2   : > { %v348_v38 = vpop.f32.mrf.mxu3 }
  0xa3   : > { %v349_v39 = vadd.f32 %v348_v38, %v307_v37 }
  0xa7   : > { %v501_v40 = vpop.f32.mrf.mxu0 }
  0xa8   : > { %v555_v41 = vpop.f32.mrf.mxu1 }
  0xaa   : > { %v391_v42 = vpop.f32.mrf.mxu2  ;;  %v445_v43 = vpop.f32.mrf.mxu3 }
  0xab   : > { %v403_v61 = vadd.f32 %v391_v42, %v340_v60  ;;  %v1474_v42 = vld [vmem:[%s1977_s2] ss:$0 sm:$0xff] }
  0xad   : > { %v457_v2 = vadd.f32 %v445_v43, %v403_v61 }
  0xaf   : > { %v504_v44 = vpop.f32.mrf.mxu0  ;;  %v513_v4 = vadd.f32 %v501_v40, %v457_v2 }
  0xb0   : > { %v558_v45 = vpop.f32.mrf.mxu1 }
  0xb1   : > { %v567_v10 = vadd.f32 %v555_v41, %v513_v4 }
  0xb2   : > { %v394_v46 = vpop.f32.mrf.mxu2  ;;  %v448_v47 = vpop.f32.mrf.mxu3 }
  0xb3   : > { %v404_v5 = vadd.f32 %v394_v46, %v343_v3 }
  0xb5   : > { %v458_v11 = vadd.f32 %v448_v47, %v404_v5 }
  0xb7   : > { %v507_v48 = vpop.f32.mrf.mxu0  ;;  %v514_v15 = vadd.f32 %v504_v44, %v458_v11 }
  0xb8   : > { %v561_v49 = vpop.f32.mrf.mxu1 }
  0xb9   : > { %v568_v22 = vadd.f32 %v558_v45, %v514_v15 }
  0xba   : > { %v397_v50 = vpop.f32.mrf.mxu2  ;;  %v451_v51 = vpop.f32.mrf.mxu3 }
  0xbb   : > { %v405_v16 = vadd.f32 %v397_v50, %v346_v34 }
  0xbd   : > { %v459_v23 = vadd.f32 %v451_v51, %v405_v16 }
  0xbf   : > { %v510_v52 = vpop.f32.mrf.mxu0  ;;  %v515_v13 = vadd.f32 %v507_v48, %v459_v23 }
  0xc0   : > { %v564_v53 = vpop.f32.mrf.mxu1 }
  0xc1   : > { %v569_v32 = vadd.f32 %v561_v49, %v515_v13 }
  0xc2   : > { %v400_v54 = vpop.f32.mrf.mxu2  ;;  %v454_v55 = vpop.f32.mrf.mxu3 }
  0xc3   : > { %v406_v12 = vadd.f32 %v400_v54, %v349_v39 }
  0xc5   : > { %v460_v33 = vadd.f32 %v454_v55, %v406_v12 }
  0xc7   : > { %v722_v56 = vpop.f32.mrf.mxu0  ;;  %v516_v38 = vadd.f32 %v510_v52, %v460_v33 }
  0xc8   : > { %v776_v57 = vpop.f32.mrf.mxu1 }
  0xc9   : > { %v570_v48 = vadd.f32 %v564_v53, %v516_v38 }
  0xca   : > { %v611_v58 = vpop.f32.mrf.mxu2  ;;  %v665_v59 = vpop.f32.mrf.mxu3 }
  0xcb   : > { %v623_v14 = vadd.f32 %v611_v58, %v567_v10 }
  0xcd   : > { %v677_v19 = vadd.f32 %v665_v59, %v623_v14 }
  0xcf   : > { %v725_v62 = vpop.f32.mrf.mxu0  ;;  %v734_v26 = vadd.f32 %v722_v56, %v677_v19 }
  0xd0   : > { %v779_v63 = vpop.f32.mrf.mxu1 }
  0xd1   : > { %v788_v28 = vadd.f32 %v776_v57, %v734_v26 }
  0xd2   : > { %v614_v0 = vpop.f32.mrf.mxu2  ;;  %v668_v1 = vpop.f32.mrf.mxu3 }
  0xd3   : > { %v624_v27 = vadd.f32 %v614_v0, %v568_v22  ;;  %v1527_v22 = vmov 32.0  }
  0xd4   : > { %1477 = vrcp.f32 %v1527_v22 }
  0xd5   : > { %v678_v29 = vadd.f32 %v668_v1, %v624_v27 }
  0xd7   : > { %v728_v6 = vpop.f32.mrf.mxu0  ;;  %v735_v35 = vadd.f32 %v725_v62, %v678_v29 }
  0xd8   : > { %v782_v7 = vpop.f32.mrf.mxu1 }
  0xd9   : > { %v789_v39 = vadd.f32 %v779_v63, %v735_v35 }
  0xda   : > { %v617_v8 = vpop.f32.mrf.mxu2  ;;  %v671_v9 = vpop.f32.mrf.mxu3 }
  0xdb   : > { %v625_v36 = vadd.f32 %v617_v8, %v569_v32 }
  0xdd   : > { %v679_v43 = vadd.f32 %v671_v9, %v625_v36 }
  0xdf   : > { %v731_v17 = vpop.f32.mrf.mxu0  ;;  %v736_v51 = vadd.f32 %v728_v6, %v679_v43 }
  0xe0   : > { %v785_v18 = vpop.f32.mrf.mxu1 }
  0xe1   : > { %v790_v57 = vadd.f32 %v782_v7, %v736_v51 }
  0xe2   : > { %v620_v20 = vpop.f32.mrf.mxu2  ;;  %v674_v21 = vpop.f32.mrf.mxu3 }
  0xe3   : > { %v626_v54 = vadd.f32 %v620_v20, %v570_v48 }
  0xe5   : > { %v680_v58 = vadd.f32 %v674_v21, %v626_v54 }
  0xe7   : > { %v942_v24 = vpop.f32.mrf.mxu0  ;;  %v737_v2 = vadd.f32 %v731_v17, %v680_v58 }
  0xe8   : > { %v996_v25 = vpop.f32.mrf.mxu1 }
  0xe9   : > { %v791_v5 = vadd.f32 %v785_v18, %v737_v2  ;;  %v1478_v18 = vpop.eup %1477 }
  0xea   : > { %v832_v30 = vpop.f32.mrf.mxu2  ;;  %v886_v31 = vpop.f32.mrf.mxu3  ;;  %v1033_v23 = vmul.f32 32.0, %v1478_v18  ;;  %vm1037_vm1 = vweird.f32 %v1478_v18 }
  0xeb   : > { %v844_v34 = vadd.f32 %v832_v30, %v788_v28 }
  0xec   : > { %v1034_v26 = vsub.f32 1.0, %v1033_v23 }
  0xed   : > { %v898_v37 = vadd.f32 %v886_v31, %v844_v34 }
  0xee   : > { %v1035_v27 = vmul.f32 %v1478_v18, %v1034_v26 }
  0xef   : > { %v954_v40 = vadd.f32 %v942_v24, %v898_v37  ;;  %v945_v41 = vpop.f32.mrf.mxu0 }
  0xf0   : > { %v999_v45 = vpop.f32.mrf.mxu1  ;;  %v1036_v13 = vadd.f32 %v1478_v18, %v1035_v27 }
  0xf1   : > { %v1008_v44 = vadd.f32 %v996_v25, %v954_v40 }
  0xf2   : > { %v835_v46 = vpop.f32.mrf.mxu2  ;;  %v889_v47 = vpop.f32.mrf.mxu3  ;;  %v1038_v12 = vsel %vm1037_vm1, %v1478_v18, %v1036_v13 }
  0xf3   : > { %v845_v49 = vadd.f32 %v835_v46, %v789_v39  ;;  %v1016_v50 = vadd.f32 %v1474_v42, %v1008_v44 }
  0xf5   : > { %v899_v55 = vadd.f32 %v889_v47, %v845_v49  ;;  %v1020_v52 = vsel %vm268_vm0, %v1016_v50, 0.0 }
  0xf6   : > { %1021 = vadd.xlane.f32.xlu0 %v1020_v52 }
  0xf7   : > { %v955_v56 = vadd.f32 %v945_v41, %v899_v55  ;;  %v948_v60 = vpop.f32.mrf.mxu0 }
  0xf8   : > { %v1002_v1 = vpop.f32.mrf.mxu1 }
  0xf9   : > { %v1009_v59 = vadd.f32 %v999_v45, %v955_v56 }
  0xfa   : > { %v838_v61 = vpop.f32.mrf.mxu2  ;;  %v892_v62 = vpop.f32.mrf.mxu3 }
  0xfb   : > { %v846_v63 = vadd.f32 %v838_v61, %v790_v57  ;;  %v1017_v0 = vadd.f32 %v1474_v42, %v1009_v59 }
  0xfd   : > { %v900_v53 = vadd.f32 %v892_v62, %v846_v63  ;;  %v1023_v3 = vsel %vm268_vm0, %v1017_v0, 0.0 }
  0xfe   : > { %1024 = vadd.xlane.f32.xlu0 %v1023_v3 }
  0xff   : > { %v956_v4 = vadd.f32 %v948_v60, %v900_v53  ;;  %v951_v11 = vpop.f32.mrf.mxu0  ;;  %v1476_v53 = vld [vmem:[%s1979_s4] ss:$0 sm:$0xff] }
 0x100   : > { %v1005_v16 = vpop.f32.mrf.mxu1 }
 0x101   : > { %v1010_v6 = vadd.f32 %v1002_v1, %v956_v4 }
 0x102   : > { %v841_v8 = vpop.f32.mrf.mxu2  ;;  %v895_v9 = vpop.f32.mrf.mxu3 }
 0x103   : > { %v847_v10 = vadd.f32 %v841_v8, %v791_v5  ;;  %v1018_v7 = vadd.f32 %v1474_v42, %v1010_v6 }
 0x105   : > { %v901_v14 = vadd.f32 %v895_v9, %v847_v10  ;;  %v1026_v15 = vsel %vm268_vm0, %v1018_v7, 0.0 }
 0x106   : > { %1027 = vadd.xlane.f32.xlu1 %v1026_v15 }
 0x107   : > { %v957_v19 = vadd.f32 %v951_v11, %v901_v14 }
 0x109   : > { %v1011_v20 = vadd.f32 %v1005_v16, %v957_v19 }
 0x10b   : > { %v1019_v17 = vadd.f32 %v1474_v42, %v1011_v20 }
 0x10d   : > { %v1029_v21 = vsel %vm268_vm0, %v1019_v17, 0.0 }
 0x10e   : > { %1030 = vadd.xlane.f32.xlu1 %v1029_v21 }
 0x169   : > { %v1022_v24 = vpop.xlane.xlu0 %1021 }
 0x16a   : > { %v1039_v25 = vmul.f32 %v1038_v12, %v1022_v24 }
 0x16c   : > { %v1043_v28 = vsub.f32 %v1016_v50, %v1039_v25 }
 0x16e   : > { %v1047_v29 = vmul.f32 %v1043_v28, %v1043_v28 }
 0x170   : > { %v1051_v30 = vsel %vm268_vm0, %v1047_v29, 0.0 }
 0x171   : > { %1052 = vadd.xlane.f32.xlu2 %v1051_v30  ;;  %v1025_v31 = vpop.xlane.xlu0 %1024 }
 0x172   : > { %v1040_v32 = vmul.f32 %v1038_v12, %v1025_v31 }
 0x174   : > { %v1921_v33 = vsub.f32 %v1017_v0, %v1040_v32  ;;  %v1475_v0 = vld [vmem:[%s1978_s3] ss:$0 sm:$0xff] }
 0x176   : > { %v1048_v34 = vmul.f32 %v1921_v33, %v1921_v33 }
 0x178   : > { %v1054_v35 = vsel %vm268_vm0, %v1048_v34, 0.0 }
 0x179   : > { %v1028_v36 = vpop.xlane.xlu1 %1027  ;;  %1055 = vadd.xlane.f32.xlu2 %v1054_v35 }
 0x17a   : > { %v1041_v37 = vmul.f32 %v1038_v12, %v1028_v36 }
 0x17c   : > { %v1926_v38 = vsub.f32 %v1018_v7, %v1041_v37 }
 0x17e   : > { %v1049_v40 = vmul.f32 %v1926_v38, %v1926_v38 }
 0x180   : > { %v1057_v41 = vsel %vm268_vm0, %v1049_v40, 0.0 }
 0x181   : > { %v1031_v42 = vpop.xlane.xlu1 %1030  ;;  %1058 = vadd.xlane.f32.xlu0 %v1057_v41 }
 0x182   : > { %v1042_v39 = vmul.f32 %v1038_v12, %v1031_v42 }
 0x184   : > { %v1931_v43 = vsub.f32 %v1019_v17, %v1042_v39 }
 0x186   : > { %v1050_v44 = vmul.f32 %v1931_v43, %v1931_v43 }
 0x188   : > { %v1060_v45 = vsel %vm268_vm0, %v1050_v44, 0.0 }
 0x189   : > { %1061 = vadd.xlane.f32.xlu1 %v1060_v45 }
 0x1e4   : > { %v1053_v46 = vpop.xlane.xlu2 %1052 }
 0x1e5   : > { %v1063_v47 = vmul.f32 %v1053_v46, %v1038_v12 }
 0x1e7   : > { %v1067_v48 = vadd.f32 1e-05, %v1063_v47 }
 0x1e9   : > { %1479 = vrsqrt.f32 %v1067_v48  ;;  %vm1077_vm3 = vweird.f32 %v1067_v48 }
 0x1ec   : > { %v1056_v49 = vpop.xlane.xlu2 %1055 }
 0x1ed   : > { %v1064_v50 = vmul.f32 %v1056_v49, %v1038_v12 }
 0x1ef   : > { %v1480_v51 = vpop.eup %1479  ;;  %v1068_v54 = vadd.f32 1e-05, %v1064_v50 }
 0x1f0   : > { %v1072_v55 = vmul.f32 %v1480_v51, %v1067_v48  ;;  %vm1078_vm2 = vweird.f32 %v1480_v51 }
 0x1f1   : > { %1481 = vrsqrt.f32 %v1068_v54  ;;  %vm1079_vm4 = vmor %vm1077_vm3, %vm1078_vm2  ;;  %vm1087_vm6 = vweird.f32 %v1068_v54 }
 0x1f2   : > { %v1073_v52 = vmul.f32 %v1480_v51, %v1072_v55 }
 0x1f4   : > { %v1074_v56 = vmul.f32 0.5, %v1073_v52  ;;  %v1059_v57 = vpop.xlane.xlu0 %1058 }
 0x1f5   : > { %v1065_v58 = vmul.f32 %v1059_v57, %v1038_v12 }
 0x1f6   : > { %v1075_v59 = vsub.f32 1.5, %v1074_v56 }
 0x1f7   : > { %v1482_v60 = vpop.eup %1481  ;;  %v1069_v61 = vadd.f32 1e-05, %v1065_v58 }
 0x1f8   : > { %v1076_v62 = vmul.f32 %v1480_v51, %v1075_v59  ;;  %v1082_v63 = vmul.f32 %v1482_v60, %v1068_v54  ;;  %vm1088_vm5 = vweird.f32 %v1482_v60 }
 0x1f9   : > { %1483 = vrsqrt.f32 %v1069_v61  ;;  %vm1089_vm7 = vmor %vm1087_vm6, %vm1088_vm5  ;;  %vm1097_vm9 = vweird.f32 %v1069_v61 }
 0x1fa   : > { %v1080_v1 = vsel %vm1079_vm4, %v1480_v51, %v1076_v62  ;;  %v1083_v2 = vmul.f32 %v1482_v60, %v1082_v63 }
 0x1fb   : > { %v1111_v3 = vmul.f32 %v1080_v1, %v1043_v28 }
 0x1fc   : > { %v1084_v4 = vmul.f32 0.5, %v1083_v2  ;;  %v1062_v5 = vpop.xlane.xlu1 %1061 }
 0x1fd   : > { %v1119_v6 = vmul.f32 %v1475_v0, %v1111_v3  ;;  %v1066_v8 = vmul.f32 %v1062_v5, %v1038_v12 }
 0x1fe   : > { %v1085_v9 = vsub.f32 1.5, %v1084_v4 }
 0x1ff   : > { %v1484_v10 = vpop.eup %1483  ;;  %v1127_v7 = vadd.f32 %v1476_v53, %v1119_v6  ;;  %v1070_v11 = vadd.f32 1e-05, %v1066_v8 }
 0x200   : > { %v1086_v14 = vmul.f32 %v1482_v60, %v1085_v9  ;;  %v1092_v15 = vmul.f32 %v1484_v10, %v1069_v61  ;;  %vm1098_vm8 = vweird.f32 %v1484_v10 }
 0x201   : > { %1131 = vst.msk [vmem:[%s1947_s6] sm:$0xff] %vm268_vm0, %v1127_v7  ;;  %1485 = vrsqrt.f32 %v1070_v11  ;;  %vm1099_vm10 = vmor %vm1097_vm9, %vm1098_vm8  ;;  %vm1107_vm12 = vweird.f32 %v1070_v11 }
 0x202   : > { %v1090_v16 = vsel %vm1089_vm7, %v1482_v60, %v1086_v14  ;;  %v1093_v19 = vmul.f32 %v1484_v10, %v1092_v15 }
 0x203   : > { %v1112_v20 = vmul.f32 %v1090_v16, %v1921_v33 }
 0x204   : > { %v1094_v17 = vmul.f32 0.5, %v1093_v19 }
 0x205   : > { %v1120_v21 = vmul.f32 %v1475_v0, %v1112_v20 }
 0x206   : > { %v1095_v22 = vsub.f32 1.5, %v1094_v17 }
 0x207   : > { %v1486_v18 = vpop.eup %1485  ;;  %v1128_v23 = vadd.f32 %v1476_v53, %v1120_v21 }
 0x208   : > { %v1096_v26 = vmul.f32 %v1484_v10, %v1095_v22  ;;  %v1102_v27 = vmul.f32 %v1486_v18, %v1070_v11  ;;  %vm1108_vm11 = vweird.f32 %v1486_v18 }
 0x209   : > { %1132 = vst.msk [vmem:[%s1947_s6 + $0x8] sm:$0xff] %vm268_vm0, %v1128_v23  ;;  %vm1109_vm13 = vmor %vm1107_vm12, %vm1108_vm11 }
 0x20a   : > { %v1100_v13 = vsel %vm1099_vm10, %v1484_v10, %v1096_v26  ;;  %v1103_v12 = vmul.f32 %v1486_v18, %v1102_v27 }
 0x20b   : > { %v1113_v24 = vmul.f32 %v1100_v13, %v1926_v38 }
 0x20c   : > { %v1104_v25 = vmul.f32 0.5, %v1103_v12 }
 0x20d   : > { %v1121_v28 = vmul.f32 %v1475_v0, %v1113_v24 }
 0x20e   : > { %v1105_v29 = vsub.f32 1.5, %v1104_v25 }
 0x20f   : > { %v1129_v30 = vadd.f32 %v1476_v53, %v1121_v28 }
 0x210   : > { %v1106_v31 = vmul.f32 %v1486_v18, %v1105_v29 }
 0x211   : > { %1133 = vst.msk [vmem:[%s1947_s6 + $0x10] sm:$0xff] %vm268_vm0, %v1129_v30 }
 0x212   : > { %v1110_v32 = vsel %vm1109_vm13, %v1486_v18, %v1106_v31 }
 0x213   : > { %v1114_v33 = vmul.f32 %v1110_v32, %v1931_v43 }
 0x215   : > { %v1122_v34 = vmul.f32 %v1475_v0, %v1114_v33 }
 0x217   : > { %v1130_v35 = vadd.f32 %v1476_v53, %v1122_v34 }
 0x219   : > { %1134 = vst.msk [vmem:[%s1947_s6 + $0x18] sm:$0xff] %vm268_vm0, %v1130_v35 }
 0x21a PF: > { %s15_s22 = sadd.s32 1, %s1525_s22   ;;  %s1981_s18 = smov %s1517_s20 }
 0x21b   : > { %p12_p7 = scmp.ge.s32.totalorder %s15_s22, 6   ;;  %s1982_s19 = smov %s1521_s21 }
 0x21c   : > { %s1983_s20 = smov %s1986_s23  ;;  %s1984_s21 = smov %s1990_s24 }
 0x21d   :  { %14 = sbr.rel (!%p12_p7) target bundleno = 3 (0x3), region = 90 }

</bundles_post_ra>
